<compile_context>
chip_gen: v7x
topology: tpu7x:2x2x1
jax: 0.10.0
libtpu: 0.0.40
codegen_flags: <defaults>
</compile_context>

<pallas_src>
import functools
import math

import jax
import jax.numpy as jnp
from jax.experimental import pallas as pl
from jax.experimental.pallas import tpu as pltpu

_LANE = 128
_SQRT_2_OVER_PI = math.sqrt(2.0 / math.pi)


def _gelu_kernel(x_ref, o_ref, *, compute_dtype):
    # Refactored polynomial (fewer VALU ops; there is no f32 FMA on v5e/v6e):
    #   inner = x * (C1 + C2*x*x)  ==  sqrt(2/pi) * (x + 0.044715*x^3)
    #   y     = h + h*tanh(inner),  h = 0.5*x
    # tanh runs on the EUP slot, so the VALU chain is ~7 ops/element.
    x = x_ref[...].astype(compute_dtype)
    c1 = jnp.asarray(_SQRT_2_OVER_PI, compute_dtype)
    c2 = jnp.asarray(_SQRT_2_OVER_PI * 0.044715, compute_dtype)
    half = jnp.asarray(0.5, compute_dtype)
    inner = x * (c1 + c2 * (x * x))
    h = half * x
    o_ref[...] = (h + h * jnp.tanh(inner)).astype(o_ref.dtype)


def _device_kind():
    try:
        return jax.devices()[0].device_kind.lower()
    except Exception:
        return ""


def _vmem_capacity_bytes():
    """Physical VMEM per TensorCore; generation-aware fallback."""
    try:
        return int(pltpu.get_tpu_info().vmem_capacity_bytes)
    except Exception:
        pass
    kind = _device_kind()
    if ("v5" in kind) or ("v6" in kind):
        return 128 * 1024 * 1024
    return 64 * 1024 * 1024  # v7x-sized (smallest current) as a safe default


def _supports_bf16_vector_math():
    """bf16 VPU/EUP exists on v6e/v7x; v5e and older must compute in f32."""
    kind = _device_kind()
    if not kind:
        return False
    for tag in ("v2", "v3", "v4", "v5"):
        if tag in kind:
            return False
    return True


def _pick_lane_cols(n, max_c):
    """Largest multiple of 128 <= max_c that evenly divides n (else None)."""
    best = None
    c = _LANE
    limit = min(max_c, n)
    while c <= limit:
        if n % c == 0:
            best = c
        c += _LANE
    return best


def gelu_pallas(x):
    """Tanh-approximation GELU (matches the reference PyTorch module)."""
    orig_shape = x.shape
    dtype = x.dtype
    itemsize = jnp.dtype(dtype).itemsize
    n_total = x.size

    # ---- 1) Lane-dense 2D slab: (rows, cols) with cols % 128 == 0 ----------
    tail_pad = 0
    if x.ndim >= 2 and x.shape[-1] >= _LANE and x.shape[-1] % _LANE == 0:
        # Last dim already lane-dense: fold leading dims into rows.
        x2 = x.reshape(-1, x.shape[-1])
    else:
        # Narrow / awkward last dim (e.g. hidden=32): flatten and re-slice
        # into a wide lane-dense layout (contiguous reshape, no data motion).
        flat = x.reshape(-1)
        c = _pick_lane_cols(n_total, 4096)
        if c is None:
            # Rare fallback (tiny / indivisible totals): one pad + one slice.
            c = _LANE
            tail_pad = (-n_total) % c
            flat = jnp.pad(flat, (0, tail_pad))
        x2 = flat.reshape(-1, c)

    rows, cols = x2.shape

    # ---- 2) VMEM-budgeted tile sizes ----------------------------------------
    vmem_cap = _vmem_capacity_bytes()
    # ~32 MiB of kernel VMEM on every generation (vmem_cap // 2 on v7x's 64MiB,
    # capped at 32 MiB on 128-MiB v5e/v6e).
    budget = min(vmem_cap // 2, 32 * 1024 * 1024)
    per_tile = budget // 4            # in + out, each double-buffered

    sublane = max(8, 32 // itemsize)  # 8 for f32, 16 for bf16, 32 for 8-bit

    if cols * itemsize * sublane <= per_tile:
        # Preferred: full-row tiles -> every DMA is one contiguous region.
        tc = cols
        tr = per_tile // (cols * itemsize)
        tr = max(sublane, (tr // sublane) * sublane)
        if tr >= rows:
            tr = rows                 # full-extent block is always legal
    else:
        # Extremely wide rows: column-tile with a divisor of cols if possible
        # (avoids partial edge column tiles); fall back to a 128-multiple cap.
        tr = rows if rows < sublane else sublane
        tc_cap = max(_LANE, per_tile // (tr * itemsize))
        tc = _pick_lane_cols(cols, tc_cap)
        if tc is None:
            tc = max(_LANE, (tc_cap // _LANE) * _LANE)

    grid_r, grid_c = pl.cdiv(rows, tr), pl.cdiv(cols, tc)
    if grid_r * grid_c == 1 and rows >= 2 * sublane:
        # >= 2 grid steps so both TensorCores stream on dual-core chips (v7x);
        # on 1-TC chips this only adds one ~0.35us grid step.
        tr = ((rows + 1) // 2 + sublane - 1) // sublane * sublane
        grid_r = pl.cdiv(rows, tr)
    grid = (grid_r, grid_c)

    # 1.5x headroom over the 4 tile buffers; <= 3/4 of physical VMEM and never
    # above 48 MiB, so even a per-chip (vs per-TC) capacity report is safe.
    vmem_limit = int(min(budget + budget // 2, vmem_cap * 3 // 4))

    # ---- 3) Compute dtype ----------------------------------------------------
    compute_dtype = jnp.float32
    if jnp.dtype(dtype) == jnp.bfloat16 and _supports_bf16_vector_math():
        compute_dtype = jnp.bfloat16

    out = pl.pallas_call(
        functools.partial(_gelu_kernel, compute_dtype=compute_dtype),
        out_shape=jax.ShapeDtypeStruct((rows, cols), dtype),
        grid_spec=pltpu.PrefetchScalarGridSpec(
            num_scalar_prefetch=0,
            grid=grid,
            in_specs=[pl.BlockSpec((tr, tc), lambda i, j: (i, j))],
            out_specs=pl.BlockSpec((tr, tc), lambda i, j: (i, j)),
        ),
        compiler_params=pltpu.CompilerParams(
            dimension_semantics=("parallel", "parallel"),
            vmem_limit_bytes=vmem_limit,
        ),
    )(x2)

    if tail_pad:
        out = out.reshape(-1)[:n_total]
    return out.reshape(orig_shape)


def gelu_ref(x):
    xf = x.astype(jnp.float32)
    c = jnp.float32(_SQRT_2_OVER_PI)
    y = 0.5 * xf * (1.0 + jnp.tanh(c * (xf + 0.044715 * xf ** 3)))
    return y.astype(x.dtype)


if __name__ == "__main__":
    key = jax.random.PRNGKey(0)
    k1, k2, k3 = jax.random.split(key, 3)

    # Shapes implied by the attention-block usage: (batch, seq, hidden).
    x_small = jax.random.normal(k1, (2, 8, 32), dtype=jnp.float32)     # narrow hidden path
    x_wide = jax.random.normal(k2, (2, 16, 256), dtype=jnp.float32)    # lane-dense hidden path
    x_bf16 = jax.random.normal(k3, (2, 16, 256), dtype=jnp.bfloat16)   # low-precision path

    y_small = jax.block_until_ready(gelu_pallas(x_small))
    y_wide = jax.block_until_ready(gelu_pallas(x_wide))
    y_bf16 = jax.block_until_ready(gelu_pallas(x_bf16))

    # f32 paths: exact-ish match to the reference.
    for x, y in ((x_small, y_small), (x_wide, y_wide)):
        y_ref = gelu_ref(x)
        assert y.shape == x.shape and y.dtype == x.dtype
        assert jnp.max(jnp.abs(y - y_ref)) < 1e-5

    # bf16 path may compute fully in bf16 (v6e/v7x) -> bf16-ulp tolerance.
    yb = y_bf16.astype(jnp.float32)
    yb_ref = gelu_ref(x_bf16).astype(jnp.float32)
    assert y_bf16.shape == x_bf16.shape and y_bf16.dtype == x_bf16.dtype
    assert bool(jnp.all(jnp.abs(yb - yb_ref) <= 2e-2 + 3e-2 * jnp.abs(yb_ref)))

    print("KERNEL_OK")
</pallas_src>

<mosaic_0001>
module attributes {stable_mosaic.version = 11 : i64} {
  func.func @_gelu_kernel(%arg0: i32, %arg1: i32, %arg2: memref<1x512xf32, #tpu.memory_space<vmem>>, %arg3: memref<1x512xf32, #tpu.memory_space<vmem>>) attributes {dimension_semantics = [#tpu.dimension_semantics<parallel>, #tpu.dimension_semantics<parallel>], iteration_bounds = array<i64: 1, 1>, scalar_prefetch = 0 : i64, scratch_operands = 0 : i64, tpu.core_type = #tpu.core_type<tc>, window_params = [{transform_indices = @transform_0, window_bounds = array<i64: 1, 512>}, {transform_indices = @transform_1, window_bounds = array<i64: 1, 512>}]} {
    %c0 = arith.constant 0 : index
    %c0_0 = arith.constant 0 : index
    %0 = vector.load %arg2[%c0, %c0_0] : memref<1x512xf32, #tpu.memory_space<vmem>>, vector<1x512xf32>
    %1 = arith.mulf %0, %0 : vector<1x512xf32>
    %cst = arith.constant 0.0356774069 : f32
    %2 = vector.broadcast %cst : f32 to vector<1x512xf32>
    %3 = arith.mulf %2, %1 : vector<1x512xf32>
    %cst_1 = arith.constant 0.797884583 : f32
    %4 = vector.broadcast %cst_1 : f32 to vector<1x512xf32>
    %5 = arith.addf %4, %3 : vector<1x512xf32>
    %6 = arith.mulf %0, %5 : vector<1x512xf32>
    %cst_2 = arith.constant 5.000000e-01 : f32
    %7 = vector.broadcast %cst_2 : f32 to vector<1x512xf32>
    %8 = arith.mulf %7, %0 : vector<1x512xf32>
    %9 = math.tanh %6 : vector<1x512xf32>
    %10 = arith.mulf %8, %9 : vector<1x512xf32>
    %11 = arith.addf %8, %10 : vector<1x512xf32>
    %c0_3 = arith.constant 0 : index
    %c0_4 = arith.constant 0 : index
    %12 = vector.load %arg3[%c0_3, %c0_4] : memref<1x512xf32, #tpu.memory_space<vmem>>, vector<1x512xf32>
    tpu.vector_store %arg3[%c0_3, %c0_4], %11 {strides = array<i32>} : memref<1x512xf32, #tpu.memory_space<vmem>>, vector<1x512xf32>,
    return
  }
  func.func @transform_0(%arg0: i32, %arg1: i32) -> (i32, i32) {
    %c0_i32 = arith.constant 0 : i32
    return %arg0, %arg1 : i32, i32
  }
  func.func @transform_1(%arg0: i32, %arg1: i32) -> (i32, i32) {
    %c0_i32 = arith.constant 0 : i32
    return %arg0, %arg1 : i32, i32
  }
}

</mosaic_0001>

<bundles_post_ra>
// kernel: tpu_custom_call.1
= control target key start
LH: loop header
LB: loop body
LE: loop exit
PB: predicated region body
PF: predicated region fallthrough
CT: control target
= control target key end

     0   :  { %6 = vsyncpa [#allocation3], 0  ;;  %s138_s0 = inlined_call_operand.hbm [shape: f32[1,512], index: 0, kind: input, shape index: {}]   ;;  %s139_s1 = inlined_call_operand.hbm [shape: f32[1,512], index: 1, kind: output, shape index: {}]  }
   0x1   :  { %7 = vsyncpa [#allocation4], 0  ;;  %s102_s6 = smov [#allocation2]   ;;  %s54_s10 = scalar_lea.hbm %s138_s0, 64 }
   0x2   :  { %s14_s7 = sshll.u32 %s102_s6, 4  ;;  %p55_p0 = scmp.ne.s32.totalorder %s138_s0, %s54_s10  ;;  %s15_s7 = int_to_ptr.vmem [resolvable:$true] %s14_s7 }
   0x3   :  { %p58_p1 = scmp.lt.u32.totalorder %s54_s10, %s138_s0 }
   0x5   :  { %p60_p2 = pnand %p58_p1, %p55_p0 }
   0x7   :  { %63 = shalt.err (!%p60_p2)
}
   0x8   :  { %s64_s15 = scalar_lea.vmem %s15_s7, 64  ;;  %p69_p4 = scmp.lt.s32.totalorder %s15_s7, %s15_s7 }
   0x9   :  { %p65_p3 = scmp.ne.s32.totalorder %s15_s7, %s64_s15  ;;  %p70_p5 = scmp.lt.s32.totalorder %s64_s15, %s64_s15 }
   0xb   :  { %p71_p6 = por %p70_p5, %p69_p4 }
   0xd   :  { %p72_p7 = pnand %p71_p6, %p65_p3 }
   0xf   :  { %75 = shalt.err (!%p72_p7)
}
  0x10   :  { %17 = dma.hbm_to_vmem [thread:$0]  %s138_s0, 64, %s15_s7, [#allocation3]  }
  0x11   :  { %98 = dma.done.wait [#allocation3], 64  }
  0x12   :  { %99 = vsyncadd [#allocation3], 4294967232  ;;  %v21_v0 = vld [vmem:[#allocation2] sm:$0xf]  ;;  %v30_v6 = vlaneseq  ;;  %s103_s18 = smov [#allocation5]  }
  0x13   :  { %v22_v1 = vmul.f32 %v21_v0, %v21_v0  ;;  %v26_v5 = vmul.f32 0.5, %v21_v0  ;;  %s41_s19 = sshll.u32 %s103_s18, 4  ;;  %s42_s19 = int_to_ptr.vmem [resolvable:$true] %s41_s19 }
  0x14   :  { %vm32_vm0 = vcmp.lt.s32.totalorder %v30_v6, 512  ;;  %s76_s20 = scalar_lea.vmem %s42_s19, 64  ;;  %p81_p9 = scmp.lt.s32.totalorder %s42_s19, %s42_s19 }
  0x15   :  { %v23_v2 = vmul.f32 0.035677407, %v22_v1  ;;  %p77_p8 = scmp.ne.s32.totalorder %s42_s19, %s76_s20  ;;  %p82_p10 = scmp.lt.s32.totalorder %s76_s20, %s76_s20 }
  0x17   :  { %v24_v3 = vadd.f32 0.7978846, %v23_v2  ;;  %p83_p11 = por %p82_p10, %p81_p9 }
  0x19   :  { %v25_v4 = vmul.f32 %v24_v3, %v21_v0  ;;  %p84_p12 = pnand %p83_p11, %p77_p8 }
  0x1b   :  { %52 = vtanh.f32 %v25_v4 }
  0x25   :  { %v53_v7 = vpop.eup %52 }
  0x26   :  { %v28_v8 = vmul.f32 %v53_v7, %v26_v5 }
  0x28   :  { %v29_v9 = vadd.f32 %v28_v8, %v26_v5 }
  0x2a   :  { %34 = vst.msk [vmem:[#allocation5] sm:$0xf] %vm32_vm0, %v29_v9 }
  0x2b   :  { %87 = shalt.err (!%p84_p12)
}
  0x2c   :  { %s88_s22 = scalar_lea.hbm %s139_s1, 64 }
  0x2d   :  { %p89_p13 = scmp.ne.s32.totalorder %s139_s1, %s88_s22  ;;  %p92_p0 = scmp.lt.u32.totalorder %s88_s22, %s139_s1 }
  0x2f   :  { %p94_p1 = pnand %p92_p0, %p89_p13 }
  0x31   :  { %97 = shalt.err (!%p94_p1)
}
  0x32   :  { %44 = dma.vmem_to_hbm [thread:$0]  %s42_s19, 64, %s139_s1, [#allocation4]  }
  0x33   :  { %100 = dma.done.wait [#allocation4], 64  }
  0x34   :  { %101 = vsyncadd [#allocation4], 4294967232 }
  0x35   :  { %48 = vsyncpa [#allocation3], 1 }
  0x36   :  { %49 = vsyncpa [#allocation4], 1 }

</bundles_post_ra>
